<compile_context>
chip_gen: v5e
topology: v5e:2x2
jax: 0.10.0
libtpu: 0.0.40
codegen_flags: <defaults>
</compile_context>

<pallas_src>
import jax
import jax.numpy as jnp
from jax.experimental import pallas as pl
from jax.experimental.pallas import tpu as pltpu

INP_DIM = 81
HID1 = 64
HS_DIM = 16

TILE_B_MAX = 4096  # multiple of 8 (sublane); sized against v7x scoped VMEM.


def reprnet_kernel(x_ref, w1_ref, b1_ref, w2_ref, b2_ref, o_ref):
    # fc1: bf16 x bf16 on the MXU, f32 accumulation. [TB, 81] @ [81, 64] + b1.
    h = jnp.dot(x_ref[...], w1_ref[...],
                preferred_element_type=jnp.float32) + b1_ref[...]
    # ELU (alpha=1.0) in f32: h if h > 0 else exp(h) - 1.  Clamp the exp arg
    # so the unused branch never produces inf for large positive h.
    h = jnp.where(h > 0.0, h, jnp.exp(jnp.minimum(h, 0.0)) - 1.0)
    # fc2: [TB, 64] @ [64, 16] + b2 (w2 upcast in VMEM; it is tiny).
    y = jnp.dot(h, w2_ref[...].astype(jnp.float32),
                preferred_element_type=jnp.float32) + b2_ref[...]
    # tanh -> output (EUP op, separate issue slot).
    o_ref[...] = jnp.tanh(y).astype(o_ref.dtype)


def reprnet_forward(x, w1, b1, w2, b2, *, tile_b_max=TILE_B_MAX):
    """x: [B, 81] float32 -> [B, 16] float32.

    x, w1, w2 are handed to the kernel as bfloat16 (halves the dominant HBM
    read of x); biases and all accumulation stay float32.
    """
    B = x.shape[0]
    x = x.astype(jnp.bfloat16)
    w1 = w1.astype(jnp.bfloat16)
    w2 = w2.astype(jnp.bfloat16)
    b1 = b1.astype(jnp.float32)
    b2 = b2.astype(jnp.float32)

    # Full-array block for small B (satisfies the (8,128) rule via the
    # "equals the full dim" case even when B is not a multiple of 8);
    # otherwise tile at tile_b_max rows and let Pallas mask the partial
    # last block.
    tile_b = B if B <= tile_b_max else tile_b_max
    grid = (pl.cdiv(B, tile_b),)

    return pl.pallas_call(
        reprnet_kernel,
        out_shape=jax.ShapeDtypeStruct((B, HS_DIM), jnp.float32),
        grid=grid,
        in_specs=[
            pl.BlockSpec((tile_b, INP_DIM), lambda i: (i, 0)),   # x: batch-tiled
            pl.BlockSpec((INP_DIM, HID1), lambda i: (0, 0)),     # w1: resident
            pl.BlockSpec((1, HID1), lambda i: (0, 0)),           # b1: resident
            pl.BlockSpec((HID1, HS_DIM), lambda i: (0, 0)),      # w2: resident
            pl.BlockSpec((1, HS_DIM), lambda i: (0, 0)),         # b2: resident
        ],
        out_specs=pl.BlockSpec((tile_b, HS_DIM), lambda i: (i, 0)),
        compiler_params=pltpu.CompilerParams(
            dimension_semantics=("parallel",),  # batch tiles split across v7x's 2 TCs
        ),
    )(x, w1, b1, w2, b2)


def init_params(key):
    """Deterministic PyTorch-Linear-style init (uniform +/- 1/sqrt(fan_in))."""
    k1, k2, k3, k4 = jax.random.split(key, 4)
    lim1 = 1.0 / jnp.sqrt(jnp.float32(INP_DIM))
    lim2 = 1.0 / jnp.sqrt(jnp.float32(HID1))
    # Stored as [in, out] (transposed from torch's [out, in]).
    w1 = jax.random.uniform(k1, (INP_DIM, HID1), jnp.float32, -lim1, lim1)
    b1 = jax.random.uniform(k2, (1, HID1), jnp.float32, -lim1, lim1)
    w2 = jax.random.uniform(k3, (HID1, HS_DIM), jnp.float32, -lim2, lim2)
    b2 = jax.random.uniform(k4, (1, HS_DIM), jnp.float32, -lim2, lim2)
    return w1, b1, w2, b2


def reference_forward(x, w1, b1, w2, b2):
    """Pure-jnp reference on the same bf16-quantized operands the kernel sees."""
    xf = x.astype(jnp.bfloat16).astype(jnp.float32)
    w1f = w1.astype(jnp.bfloat16).astype(jnp.float32)
    w2f = w2.astype(jnp.bfloat16).astype(jnp.float32)
    h = jnp.dot(xf, w1f, precision=jax.lax.Precision.HIGHEST) + b1
    h = jnp.where(h > 0.0, h, jnp.exp(jnp.minimum(h, 0.0)) - 1.0)  # ELU
    y = jnp.dot(h, w2f, precision=jax.lax.Precision.HIGHEST) + b2
    return jnp.tanh(y)


if __name__ == "__main__":
    key = jax.random.PRNGKey(0)
    kx, kp = jax.random.split(key)
    w1, b1, w2, b2 = init_params(kp)

    # Small single-tile case (full-array block).
    B = 64
    x = jax.random.normal(kx, (B, INP_DIM), jnp.float32)
    out = jax.block_until_ready(reprnet_forward(x, w1, b1, w2, b2))
    ref = reference_forward(x, w1, b1, w2, b2)
    assert out.shape == (B, HS_DIM)
    assert jnp.allclose(out, ref, atol=1e-3, rtol=1e-3)

    # Multi-tile case with a partial last block (exercises the batch pipeline
    # and the masked writeback of the last tile).
    B2 = 100
    x2 = jax.random.normal(kx, (B2, INP_DIM), jnp.float32)
    out2 = jax.block_until_ready(
        reprnet_forward(x2, w1, b1, w2, b2, tile_b_max=32))
    ref2 = reference_forward(x2, w1, b1, w2, b2)
    assert out2.shape == (B2, HS_DIM)
    assert jnp.allclose(out2, ref2, atol=1e-3, rtol=1e-3)

    print("KERNEL_OK")
</pallas_src>

<mosaic_0001>
module attributes {stable_mosaic.version = 11 : i64} {
  func.func @reprnet_kernel(%arg0: i32, %arg1: memref<64x81xbf16, #tpu.memory_space<vmem>>, %arg2: memref<81x64xbf16, #tpu.memory_space<vmem>>, %arg3: memref<1x64xf32, #tpu.memory_space<vmem>>, %arg4: memref<64x16xbf16, #tpu.memory_space<vmem>>, %arg5: memref<1x16xf32, #tpu.memory_space<vmem>>, %arg6: memref<64x16xf32, #tpu.memory_space<vmem>>) attributes {dimension_semantics = [#tpu.dimension_semantics<parallel>], iteration_bounds = array<i64: 1>, scalar_prefetch = 0 : i64, scratch_operands = 0 : i64, tpu.core_type = #tpu.core_type<tc>, window_params = [{transform_indices = @transform_0, window_bounds = array<i64: 64, 81>}, {pipeline_mode = #tpu.pipeline_mode<synchronous>, transform_indices = @transform_1, window_bounds = array<i64: 81, 64>}, {pipeline_mode = #tpu.pipeline_mode<synchronous>, transform_indices = @transform_2, window_bounds = array<i64: 1, 64>}, {pipeline_mode = #tpu.pipeline_mode<synchronous>, transform_indices = @transform_3, window_bounds = array<i64: 64, 16>}, {pipeline_mode = #tpu.pipeline_mode<synchronous>, transform_indices = @transform_4, window_bounds = array<i64: 1, 16>}, {transform_indices = @transform_5, window_bounds = array<i64: 64, 16>}]} {
    %c0 = arith.constant 0 : index
    %c0_0 = arith.constant 0 : index
    %0 = vector.load %arg1[%c0, %c0_0] : memref<64x81xbf16, #tpu.memory_space<vmem>>, vector<64x81xbf16>
    %c0_1 = arith.constant 0 : index
    %c0_2 = arith.constant 0 : index
    %1 = vector.load %arg2[%c0_1, %c0_2] : memref<81x64xbf16, #tpu.memory_space<vmem>>, vector<81x64xbf16>
    %cst = arith.constant dense<0.000000e+00> : vector<64x64xf32>
    %2 = tpu.matmul %0, %1, %cst {dimension_numbers = #tpu.dot_dimension_numbers<[1], [0], [0], [1], [0, 0, 1, 1], [], []>} : vector<64x81xbf16>, vector<81x64xbf16>, vector<64x64xf32> -> vector<64x64xf32>
    %c0_3 = arith.constant 0 : index
    %c0_4 = arith.constant 0 : index
    %3 = vector.load %arg3[%c0_3, %c0_4] : memref<1x64xf32, #tpu.memory_space<vmem>>, vector<1x64xf32>
    %4 = vector.broadcast %3 : vector<1x64xf32> to vector<64x64xf32>
    %5 = arith.addf %2, %4 : vector<64x64xf32>
    %cst_5 = arith.constant 0.000000e+00 : f32
    %6 = vector.broadcast %cst_5 : f32 to vector<64x64xf32>
    %7 = arith.cmpf ogt, %5, %6 : vector<64x64xf32>
    %cst_6 = arith.constant 0.000000e+00 : f32
    %8 = vector.broadcast %cst_6 : f32 to vector<64x64xf32>
    %9 = arith.minimumf %5, %8 : vector<64x64xf32>
    %10 = math.exp %9 : vector<64x64xf32>
    %cst_7 = arith.constant 1.000000e+00 : f32
    %11 = vector.broadcast %cst_7 : f32 to vector<64x64xf32>
    %12 = arith.subf %10, %11 : vector<64x64xf32>
    %13 = arith.select %7, %5, %12 : vector<64x64xi1>, vector<64x64xf32>
    %c0_8 = arith.constant 0 : index
    %c0_9 = arith.constant 0 : index
    %14 = vector.load %arg4[%c0_8, %c0_9] : memref<64x16xbf16, #tpu.memory_space<vmem>>, vector<64x16xbf16>
    %15 = arith.extf %14 : vector<64x16xbf16> to vector<64x16xf32>
    %cst_10 = arith.constant dense<0.000000e+00> : vector<64x16xf32>
    %16 = tpu.matmul %13, %15, %cst_10 {dimension_numbers = #tpu.dot_dimension_numbers<[1], [0], [0], [1], [0, 0, 1, 1], [], []>} : vector<64x64xf32>, vector<64x16xf32>, vector<64x16xf32> -> vector<64x16xf32>
    %c0_11 = arith.constant 0 : index
    %c0_12 = arith.constant 0 : index
    %17 = vector.load %arg5[%c0_11, %c0_12] : memref<1x16xf32, #tpu.memory_space<vmem>>, vector<1x16xf32>
    %18 = vector.broadcast %17 : vector<1x16xf32> to vector<64x16xf32>
    %19 = arith.addf %16, %18 : vector<64x16xf32>
    %20 = math.tanh %19 : vector<64x16xf32>
    %c0_13 = arith.constant 0 : index
    %c0_14 = arith.constant 0 : index
    %21 = vector.load %arg6[%c0_13, %c0_14] : memref<64x16xf32, #tpu.memory_space<vmem>>, vector<64x16xf32>
    tpu.vector_store %arg6[%c0_13, %c0_14], %20 {strides = array<i32>} : memref<64x16xf32, #tpu.memory_space<vmem>>, vector<64x16xf32>,
    return
  }
  func.func @transform_0(%arg0: i32) -> (i32, i32) {
    %c0_i32 = arith.constant 0 : i32
    %c0_i32_0 = arith.constant 0 : i32
    return %arg0, %c0_i32 : i32, i32
  }
  func.func @transform_1(%arg0: i32) -> (i32, i32) {
    %c0_i32 = arith.constant 0 : i32
    %c0_i32_0 = arith.constant 0 : i32
    %c0_i32_1 = arith.constant 0 : i32
    return %c0_i32, %c0_i32_0 : i32, i32
  }
  func.func @transform_2(%arg0: i32) -> (i32, i32) {
    %c0_i32 = arith.constant 0 : i32
    %c0_i32_0 = arith.constant 0 : i32
    %c0_i32_1 = arith.constant 0 : i32
    return %c0_i32, %c0_i32_0 : i32, i32
  }
  func.func @transform_3(%arg0: i32) -> (i32, i32) {
    %c0_i32 = arith.constant 0 : i32
    %c0_i32_0 = arith.constant 0 : i32
    %c0_i32_1 = arith.constant 0 : i32
    return %c0_i32, %c0_i32_0 : i32, i32
  }
  func.func @transform_4(%arg0: i32) -> (i32, i32) {
    %c0_i32 = arith.constant 0 : i32
    %c0_i32_0 = arith.constant 0 : i32
    %c0_i32_1 = arith.constant 0 : i32
    return %c0_i32, %c0_i32_0 : i32, i32
  }
  func.func @transform_5(%arg0: i32) -> (i32, i32) {
    %c0_i32 = arith.constant 0 : i32
    %c0_i32_0 = arith.constant 0 : i32
    return %arg0, %c0_i32 : i32, i32
  }
}

</mosaic_0001>

<bundles_post_ra>
// kernel: tpu_custom_call.1
= control target key start
LH: loop header
LB: loop body
LE: loop exit
PB: predicated region body
PF: predicated region fallthrough
CT: control target
= control target key end

     0   :  { %vm110_vm0 = vcmask 1040384   ;;  %v433_v2 = vmov 0   ;;  %vm97_vm1 = vcmask 662528   ;;  %vm213_vm2 = vcmask 523264   ;;  %s552_s1 = inlined_call_operand.vmem [shape: bf16[81,64], index: 1, kind: input, shape index: {}]   ;;  %s553_s2 = inlined_call_operand.vmem [shape: f32[1,64], index: 2, kind: input, shape index: {}]   ;;  %s554_s0 = inlined_call_operand.vmem [shape: bf16[64,81], index: 0, kind: input, shape index: {}]   ;;  %s555_s4 = inlined_call_operand.vmem [shape: f32[1,16], index: 4, kind: input, shape index: {}]   ;;  %s556_s3 = inlined_call_operand.vmem [shape: bf16[64,16], index: 3, kind: input, shape index: {}]   ;;  %s557_s5 = inlined_call_operand.vmem [shape: f32[64,16], index: 5, kind: output, shape index: {}]  }
   0x1   :  { %v39_v0 = vld [vmem:[%s552_s1 + $0x28] sm:$0x1]  ;;  %v112_v3 = vsel %vm110_vm0, 65535, %v433_v2  ;;  %v364_v6 = vld [vmem:[%s552_s1 + $0x20] sm:$0xff]  ;;  %v363_v7 = vld [vmem:[%s552_s1 + $0x18] sm:$0xff]  ;;  %vm287_vm11 = vcmask 130048  }
   0x2   :  { %v85_v1 = vunpack.c.l.b16 %v39_v0  ;;  %v362_v8 = vld [vmem:[%s552_s1 + $0x10] sm:$0xff]  ;;  %v361_v9 = vld [vmem:[%s552_s1 + $0x8] sm:$0xff]  ;;  %v360_v10 = vld [vmem:[%s552_s1] sm:$0xff] }
   0x3   :  { %v356_v11 = vld [vmem:[%s554_s0] sm:$0xff]  ;;  %v358_v12 = vld [vmem:[%s554_s0 + $0x10] sm:$0xff]  ;;  %v357_v13 = vld [vmem:[%s554_s0 + $0x8] sm:$0xff] }
   0x4   :  { %v91_v4 = vpack.c.b16 %v85_v1, %v85_v1  ;;  %v359_v14 = vld [vmem:[%s554_s0 + $0x18] sm:$0xff]  ;;  %v382_v18 = vld [vmem:[%s556_s3 + $0x10] sm:$0xff]   ;;  %v381_v21 = vld [vmem:[%s556_s3 + $0x8] sm:$0xff]  }
   0x5   :  { %v383_v15 = vld [vmem:[%s556_s3 + $0x18] sm:$0xff]   ;;  %v376_v19 = vunpack.c.h.bf16 %v382_v18  ;;  %v375_v20 = vunpack.c.l.bf16 %v382_v18  ;;  %v372_v22 = vunpack.c.h.bf16 %v381_v21  ;;  %v371_v23 = vunpack.c.l.bf16 %v381_v21  ;;  %v366_v24 = vld [vmem:[%s556_s3] sm:$0xff]  }
   0x6   :  { %v114_v5 = vand.u32 %v112_v3, %v91_v4  ;;  %v380_v16 = vunpack.c.h.bf16 %v383_v15  ;;  %v379_v17 = vunpack.c.l.bf16 %v383_v15  ;;  %v368_v25 = vunpack.c.h.bf16 %v366_v24  ;;  %v399_v27 = vld [vmem:[%s553_s2] ss:$0 sm:$0xff] }
   0x7   :  { %v367_v26 = vunpack.c.l.bf16 %v366_v24 }
   0x8   :  { %118 = vmatpush.bf16.msra.mxu0 %v114_v5  ;;  %384 = vmatpush.bf16.msra.mxu2 %v114_v5 }
   0x9   :  { %246 = vmatpush.msra.mxu1 %v380_v16  ;;  %390 = vmatpush.msra.mxu3 %v380_v16 }
   0xb   :  { %247 = vmatpush.msra.mxu1 %v379_v17  ;;  %391 = vmatpush.msra.mxu3 %v379_v17 }
   0xc   :  { %119 = vmatpush.bf16.msra.mxu0 %v364_v6  ;;  %385 = vmatpush.bf16.msra.mxu2 %v364_v6 }
   0xd   :  { %248 = vmatpush.msra.mxu1 %v376_v19  ;;  %392 = vmatpush.msra.mxu3 %v376_v19 }
   0xf   :  { %249 = vmatpush.msra.mxu1 %v375_v20  ;;  %393 = vmatpush.msra.mxu3 %v375_v20  ;;  %v400_v20 = vld [vmem:[%s555_s4] ss:$0 sm:$0xff] }
  0x10   :  { %120 = vmatpush.bf16.msra.mxu0 %v363_v7  ;;  %386 = vmatpush.bf16.msra.mxu2 %v363_v7 }
  0x11   :  { %250 = vmatpush.msra.mxu1 %v372_v22  ;;  %394 = vmatpush.msra.mxu3 %v372_v22 }
  0x13   :  { %251 = vmatpush.msra.mxu1 %v371_v23  ;;  %395 = vmatpush.msra.mxu3 %v371_v23 }
  0x14   :  { %121 = vmatpush.bf16.msra.mxu0 %v362_v8  ;;  %387 = vmatpush.bf16.msra.mxu2 %v362_v8 }
  0x15   :  { %252 = vmatpush.msra.mxu1 %v368_v25  ;;  %396 = vmatpush.msra.mxu3 %v368_v25 }
  0x17   :  { %253 = vmatpush.msra.mxu1 %v367_v26  ;;  %397 = vmatpush.msra.mxu3 %v367_v26 }
  0x18   :  { %122 = vmatpush.bf16.msra.mxu0 %v361_v9  ;;  %388 = vmatpush.bf16.msra.mxu2 %v361_v9 }
  0x1c   :  { %123 = vmatpush.bf16.msra.mxu0 %v360_v10  ;;  %389 = vmatpush.bf16.msra.mxu2 %v360_v10 }
  0x1f   :  { %336 = vmatmul.msk.bf16.vlgmr.msra.gmra.mxu0 %vm97_vm1, %v356_v11  ;;  %338 = vmatmul.msk.bf16.vlgmr.msra.gmra.mxu2 %vm97_vm1, %v358_v12 }
  0x2f   :  { %337 = vmatmul.msk.bf16.gmra.mxu0 %vm97_vm1, %v357_v13  ;;  %339 = vmatmul.msk.bf16.gmra.mxu2 %vm97_vm1, %v359_v14 }
  0x9c   :  { %v125_v28 = vpop.f32.mrf.mxu0 }
  0x9d   :  { %v126_v29 = vadd.f32 %v399_v27, %v125_v28 }
  0x9f   :  { %v153_v30 = vmin.f32 %v126_v29, 0.0  ;;  %vm145_vm3 = vcmp.gt.f32.partialorder %v126_v29, 0.0 }
  0xa1   :  { %v161_v31 = vmul.f32 1.442695, %v153_v30 }
  0xa2   :  { %v135_v32 = vpop.f32.mrf.mxu2 }
  0xa3   :  { %401 = vpow2.f32 %v161_v31  ;;  %v136_v51 = vadd.f32 %v399_v27, %v135_v32 }
  0xa4   :  { %v127_v33 = vpop.f32.mrf.mxu0 }
  0xa5   :  { %v128_v34 = vadd.f32 %v399_v27, %v127_v33  ;;  %v157_v58 = vmin.f32 %v136_v51, 0.0  ;;  %vm149_vm10 = vcmp.gt.f32.partialorder %v136_v51, 0.0 }
  0xa7   :  { %v154_v35 = vmin.f32 %v128_v34, 0.0  ;;  %vm146_vm4 = vcmp.gt.f32.partialorder %v128_v34, 0.0  ;;  %v169_v3 = vmul.f32 1.442695, %v157_v58 }
  0xa9   :  { %v402_v36 = vpop.eup %401  ;;  %v163_v37 = vmul.f32 1.442695, %v154_v35 }
  0xaa   :  { %v137_v38 = vpop.f32.mrf.mxu2  ;;  %v340_v39 = vadd.f32 -1.0, %v402_v36 }
  0xab   :  { %403 = vpow2.f32 %v163_v37  ;;  %v138_v40 = vadd.f32 %v399_v27, %v137_v38 }
  0xac   :  { %v130_v41 = vpop.f32.mrf.mxu0  ;;  %v185_v42 = vsel %vm145_vm3, %v126_v29, %v340_v39 }
  0xad   :  { %v158_v43 = vmin.f32 %v138_v40, 0.0  ;;  %v131_v44 = vadd.f32 %v399_v27, %v130_v41  ;;  %348 = vmatmul.msk.f32.vlgmr.msra.gmra.mxu1 %vm213_vm2, %v185_v42  ;;  %vm150_vm5 = vcmp.gt.f32.partialorder %v138_v40, 0.0 }
  0xaf   :  { %v171_v45 = vmul.f32 1.442695, %v158_v43  ;;  %v155_v46 = vmin.f32 %v131_v44, 0.0  ;;  %vm147_vm6 = vcmp.gt.f32.partialorder %v131_v44, 0.0 }
  0xb1   :  { %v404_v47 = vpop.eup %403  ;;  %405 = vpow2.f32 %v171_v45  ;;  %v165_v48 = vmul.f32 1.442695, %v155_v46 }
  0xb2   :  { %v140_v49 = vpop.f32.mrf.mxu2  ;;  %v341_v50 = vadd.f32 -1.0, %v404_v47 }
  0xb3   :  { %407 = vpow2.f32 %v165_v48  ;;  %v141_v52 = vadd.f32 %v399_v27, %v140_v49 }
  0xb4   :  { %v132_v53 = vpop.f32.mrf.mxu0  ;;  %v186_v54 = vsel %vm146_vm4, %v128_v34, %v341_v50 }
  0xb5   :  { %v159_v55 = vmin.f32 %v141_v52, 0.0  ;;  %v133_v56 = vadd.f32 %v399_v27, %v132_v53  ;;  %349 = vmatmul.msk.f32.gmra.mxu1 %vm213_vm2, %v186_v54  ;;  %vm151_vm7 = vcmp.gt.f32.partialorder %v141_v52, 0.0 }
  0xb7   :  { %v406_v57 = vpop.eup %405  ;;  %v173_v59 = vmul.f32 1.442695, %v159_v55  ;;  %v156_v60 = vmin.f32 %v133_v56, 0.0  ;;  %vm148_vm8 = vcmp.gt.f32.partialorder %v133_v56, 0.0 }
  0xb8   :  { %v345_v61 = vadd.f32 -1.0, %v406_v57 }
  0xb9   :  { %v408_v62 = vpop.eup %407  ;;  %409 = vpow2.f32 %v173_v59  ;;  %v167_v63 = vmul.f32 1.442695, %v156_v60 }
  0xba   :  { %v142_v0 = vpop.f32.mrf.mxu2  ;;  %v190_v1 = vsel %vm150_vm5, %v138_v40, %v345_v61  ;;  %v342_v2 = vadd.f32 -1.0, %v408_v62 }
  0xbb   :  { %411 = vpow2.f32 %v167_v63  ;;  %v143_v4 = vadd.f32 %v399_v27, %v142_v0  ;;  %353 = vmatmul.msk.f32.vlgmr.msra.gmra.mxu3 %vm213_vm2, %v190_v1 }
  0xbc   :  { %v187_v5 = vsel %vm147_vm6, %v131_v44, %v342_v2  ;;  %413 = vpow2.f32 %v169_v3 }
  0xbd   :  { %v160_v6 = vmin.f32 %v143_v4, 0.0  ;;  %350 = vmatmul.msk.f32.gmra.mxu1 %vm213_vm2, %v187_v5  ;;  %vm152_vm9 = vcmp.gt.f32.partialorder %v143_v4, 0.0 }
  0xbf   :  { %v410_v7 = vpop.eup %409  ;;  %v175_v8 = vmul.f32 1.442695, %v160_v6 }
  0xc0   :  { %v346_v9 = vadd.f32 -1.0, %v410_v7 }
  0xc1   :  { %v412_v10 = vpop.eup %411  ;;  %415 = vpow2.f32 %v175_v8 }
  0xc2   :  { %v191_v11 = vsel %vm151_vm7, %v141_v52, %v346_v9  ;;  %v343_v12 = vadd.f32 -1.0, %v412_v10  ;;  %v414_v14 = vpop.eup %413 }
  0xc3   :  { %354 = vmatmul.msk.f32.gmra.mxu3 %vm213_vm2, %v191_v11  ;;  %v344_v17 = vadd.f32 -1.0, %v414_v14 }
  0xc4   :  { %v188_v13 = vsel %vm148_vm8, %v133_v56, %v343_v12 }
  0xc5   :  { %351 = vmatmul.msk.f32.gmra.mxu1 %vm213_vm2, %v188_v13  ;;  %v189_v19 = vsel %vm149_vm10, %v136_v51, %v344_v17 }
  0xc7   :  { %v416_v15 = vpop.eup %415 }
  0xc8   :  { %v347_v16 = vadd.f32 -1.0, %v416_v15 }
  0xca   :  { %v192_v18 = vsel %vm152_vm9, %v143_v4, %v347_v16 }
  0xcb   :  { %355 = vmatmul.msk.f32.gmra.mxu3 %vm213_vm2, %v192_v18 }
  0xcd   :  { %352 = vmatmul.msk.f32.gmra.mxu1 %vm213_vm2, %v189_v19 }
 0x12a   :  { %v255_v21 = vpop.f32.mrf.mxu1 }
 0x12b   :  { %v256_v22 = vadd.f32 %v400_v20, %v255_v21 }
 0x12d   :  { %417 = vtanh.f32 %v256_v22 }
 0x132   :  { %v258_v23 = vpop.f32.mrf.mxu1 }
 0x133   :  { %v418_v24 = vpop.eup %417  ;;  %v259_v25 = vadd.f32 %v400_v20, %v258_v23 }
 0x134   :  { %288 = vst.msk [vmem:[%s557_s5] sm:$0xff] %vm287_vm11, %v418_v24 }
 0x135   :  { %419 = vtanh.f32 %v259_v25 }
 0x13a   :  { %v261_v26 = vpop.f32.mrf.mxu1 }
 0x13b   :  { %v420_v27 = vpop.eup %419  ;;  %v262_v28 = vadd.f32 %v400_v20, %v261_v26 }
 0x13c   :  { %289 = vst.msk [vmem:[%s557_s5 + $0x8] sm:$0xff] %vm287_vm11, %v420_v27 }
 0x13d   :  { %421 = vtanh.f32 %v262_v28 }
 0x13e   :  { %v270_v29 = vpop.f32.mrf.mxu3 }
 0x13f   :  { %v271_v30 = vadd.f32 %v400_v20, %v270_v29 }
 0x141   :  { %423 = vtanh.f32 %v271_v30 }
 0x142   :  { %v264_v31 = vpop.f32.mrf.mxu1 }
 0x143   :  { %v422_v32 = vpop.eup %421  ;;  %v265_v33 = vadd.f32 %v400_v20, %v264_v31 }
 0x144   :  { %290 = vst.msk [vmem:[%s557_s5 + $0x10] sm:$0xff] %vm287_vm11, %v422_v32 }
 0x145   :  { %425 = vtanh.f32 %v265_v33 }
 0x146   :  { %v273_v34 = vpop.f32.mrf.mxu3 }
 0x147   :  { %v424_v35 = vpop.eup %423  ;;  %v274_v36 = vadd.f32 %v400_v20, %v273_v34 }
 0x148   :  { %293 = vst.msk [vmem:[%s557_s5 + $0x28] sm:$0xff] %vm287_vm11, %v424_v35 }
 0x149   :  { %427 = vtanh.f32 %v274_v36 }
 0x14a   :  { %v267_v37 = vpop.f32.mrf.mxu1 }
 0x14b   :  { %v426_v38 = vpop.eup %425  ;;  %v268_v39 = vadd.f32 %v400_v20, %v267_v37 }
 0x14c   :  { %291 = vst.msk [vmem:[%s557_s5 + $0x18] sm:$0xff] %vm287_vm11, %v426_v38 }
 0x14d   :  { %429 = vtanh.f32 %v268_v39 }
 0x14e   :  { %v276_v40 = vpop.f32.mrf.mxu3 }
 0x14f   :  { %v428_v41 = vpop.eup %427  ;;  %v277_v42 = vadd.f32 %v400_v20, %v276_v40 }
 0x150   :  { %294 = vst.msk [vmem:[%s557_s5 + $0x30] sm:$0xff] %vm287_vm11, %v428_v41 }
 0x151   :  { %431 = vtanh.f32 %v277_v42 }
 0x153   :  { %v430_v43 = vpop.eup %429 }
 0x154   :  { %292 = vst.msk [vmem:[%s557_s5 + $0x20] sm:$0xff] %vm287_vm11, %v430_v43 }
 0x157   :  { %v432_v44 = vpop.eup %431 }
 0x158   :  { %295 = vst.msk [vmem:[%s557_s5 + $0x38] sm:$0xff] %vm287_vm11, %v432_v44 }

</bundles_post_ra>
